<compile_context>
chip_gen: v5e
topology: v5e:2x2
jax: 0.10.0
libtpu: 0.0.40
codegen_flags: <defaults>
</compile_context>

<pallas_src>
import math
from functools import partial

import jax
import jax.numpy as jnp
from jax import lax
from jax.experimental import pallas as pl
from jax.experimental.pallas import tpu as pltpu

# Matmul tile caps (bf16 blocks).  At the caps the double-buffered working set
# is ~8-10 MiB, comfortably inside v7x's 64 MiB VMEM and the default scoped
# limits everywhere; _VMEM_LIMIT only raises headroom for big-shape cases.
_TM_CAP, _TK_CAP, _TN_CAP = 512, 1024, 512
_VMEM_LIMIT = 48 * 1024 * 1024


def _ru(x, m):
    return ((x + m - 1) // m) * m


def _plan(d, cap, align):
    """Tile plan for one dim: prefer the full (unpadded) dim when it fits,
    then an `align`-aligned divisor, and only pad as a last resort."""
    if d <= cap:
        return d, d
    t = (cap // align) * align
    while t >= align:
        if d % t == 0:
            return t, d
        t -= align
    nt = -(-d // cap)
    t = _ru(-(-d // nt), align)
    return t, t * nt


def _pick_div(d, cap, align):
    """Largest `align`-aligned divisor of d that is <= cap (or d itself)."""
    if d <= cap:
        return d
    t = (cap // align) * align
    while t >= align:
        if d % t == 0:
            return t
        t -= align
    return d


# ----------------------------------------------------------------------------
# Tiled batched matmul kernel:  (B, M, K) @ (K, N)  with fused epilogue
# (bias + per-batch cond bias + optional activation + fused residual add),
# bf16 operands/outputs, f32 accumulation.
# ----------------------------------------------------------------------------
def _bmm_kernel(a_ref, w_ref, rb_ref, *rest, activation, has_res, single_k):
    if has_res:
        res_ref = rest[0]
        rest = rest[1:]
    else:
        res_ref = None
    if single_k:
        (o_ref,) = rest
        acc_ref = None
    else:
        o_ref, acc_ref = rest

    def epilogue(acc):
        acc = acc + rb_ref[0]                     # bias (+ per-batch cond bias)
        if activation == "swish":
            acc = acc * jax.nn.sigmoid(acc)
        elif activation == "sigmoid":
            acc = jax.nn.sigmoid(acc)
        if has_res:
            acc = acc + res_ref[0].astype(jnp.float32)   # fused residual add
        o_ref[0] = acc.astype(o_ref.dtype)

    if single_k:
        # Single K tile: no accumulator scratch, no init/finalize passes.
        epilogue(jnp.dot(a_ref[0], w_ref[...], preferred_element_type=jnp.float32))
    else:
        k = pl.program_id(3)

        @pl.when(k == 0)
        def _():
            acc_ref[...] = jnp.zeros_like(acc_ref)

        acc_ref[...] += jnp.dot(a_ref[0], w_ref[...],
                                preferred_element_type=jnp.float32)

        @pl.when(k == pl.num_programs(3) - 1)
        def _():
            epilogue(acc_ref[...])


def pallas_bmm(a, w_p, bias_p, n_out, *, activation="none",
               row_bias=None, residual=None):
    """Batched matmul with fused epilogue.  Output is bf16.

    a        : (B, M, K) activations (cast to bf16; usually already bf16)
    w_p      : (Kp, Np) prepared bf16 weight
    bias_p   : (Np,) f32 prepared bias
    row_bias : optional (B, n_out) per-batch bias (cond embedding)
    residual : optional (B, M, n_out) tensor added at the output store
    """
    B, M, K = a.shape
    Kp, Np = w_p.shape
    tm, Mp = _plan(M, _TM_CAP, 8)
    tk, Kp2 = _plan(K, _TK_CAP, 128)
    tn, Np2 = _plan(n_out, _TN_CAP, 128)
    assert (Kp2, Np2) == (Kp, Np), "weight prepared with different padding"

    a = a.astype(jnp.bfloat16)
    if (Mp, Kp) != (M, K):                 # rare fallback; never hit in the demo
        a = jnp.pad(a, ((0, 0), (0, Mp - M), (0, Kp - K)))

    rb = jnp.broadcast_to(bias_p.astype(jnp.float32).reshape(1, 1, Np), (B, 1, Np))
    if row_bias is not None:
        rbias = row_bias.astype(jnp.float32)
        if Np != n_out:
            rbias = jnp.pad(rbias, ((0, 0), (0, Np - n_out)))
        rb = rb + rbias[:, None, :]

    args = [a, w_p, rb]
    in_specs = [
        pl.BlockSpec((1, tm, tk), lambda b, i, j, k: (b, i, k)),
        pl.BlockSpec((tk, tn), lambda b, i, j, k: (k, j)),
        pl.BlockSpec((1, 1, tn), lambda b, i, j, k: (b, 0, j)),
    ]
    has_res = residual is not None
    if has_res:
        res = residual.astype(jnp.bfloat16)
        if res.shape != (B, Mp, Np):
            res = jnp.pad(res, ((0, 0), (0, Mp - M), (0, Np - n_out)))
        args.append(res)
        in_specs.append(pl.BlockSpec((1, tm, tn), lambda b, i, j, k: (b, i, j)))

    nk = Kp // tk
    single_k = nk == 1
    scratch = [] if single_k else [pltpu.VMEM((tm, tn), jnp.float32)]

    out = pl.pallas_call(
        partial(_bmm_kernel, activation=activation, has_res=has_res,
                single_k=single_k),
        grid=(B, Mp // tm, Np // tn, nk),
        in_specs=in_specs,
        out_specs=pl.BlockSpec((1, tm, tn), lambda b, i, j, k: (b, i, j)),
        out_shape=jax.ShapeDtypeStruct((B, Mp, Np), jnp.bfloat16),
        scratch_shapes=scratch,
        compiler_params=pltpu.CompilerParams(
            dimension_semantics=("parallel", "parallel", "parallel", "arbitrary"),
            vmem_limit_bytes=_VMEM_LIMIT),
    )(*args)
    if (Mp, Np) != (M, n_out):
        out = out[:, :M, :n_out]
    return out


# ----------------------------------------------------------------------------
# GroupNorm (+ fused Swish): lane-dense, HW-tiled, two-pass (stats / apply)
# in one pallas_call via a 2-extent "pass" grid axis.  bf16 in / bf16 out.
# ----------------------------------------------------------------------------
def _gn_kernel(x_ref, g_ref, b_ref, o_ref, s1, s2, sc, sh, *,
               n_groups, n_ch, hw, eps, swish):
    p = pl.program_id(1)      # 0 = statistics pass, 1 = normalize pass
    l = pl.program_id(2)      # tile index over the flattened (HW*C)/LW rows

    @pl.when((p == 0) & (l == 0))
    def _():
        s1[...] = jnp.zeros_like(s1)
        s2[...] = jnp.zeros_like(s2)

    @pl.when(p == 0)
    def _():
        x = x_ref[0].astype(jnp.float32)
        s1[...] += jnp.sum(x, axis=0, keepdims=True)
        s2[...] += jnp.sum(x * x, axis=0, keepdims=True)

    @pl.when((p == 1) & (l == 0))
    def _():
        lw = s1.shape[-1]
        cg = n_ch // n_groups
        # lane -> group membership (LW, G); tiny, built from 2-D iotas.
        lane = lax.broadcasted_iota(jnp.int32, (lw, n_groups), 0)
        grp = lax.broadcasted_iota(jnp.int32, (lw, n_groups), 1)
        memb = ((lane % n_ch) // cg == grp).astype(jnp.float32)
        gs1 = jnp.dot(s1[...], memb, preferred_element_type=jnp.float32)   # (1,G)
        gs2 = jnp.dot(s2[...], memb, preferred_element_type=jnp.float32)
        cnt = float(hw * cg)
        mean_g = gs1 / cnt
        var_g = jnp.maximum(gs2 / cnt - mean_g * mean_g, 0.0)
        inv_g = lax.rsqrt(var_g + eps)
        dn = (((1,), (1,)), ((), ()))                                      # (1,G).(LW,G)^T
        mean_l = lax.dot_general(mean_g, memb, dn,
                                 preferred_element_type=jnp.float32)      # (1,LW)
        inv_l = lax.dot_general(inv_g, memb, dn,
                                preferred_element_type=jnp.float32)
        sc[...] = g_ref[...] * inv_l
        sh[...] = b_ref[...] - mean_l * sc[...]

    @pl.when(p == 1)
    def _():
        x = x_ref[0].astype(jnp.float32)
        y = x * sc[...] + sh[...]
        if swish:
            y = y * jax.nn.sigmoid(y)
        o_ref[0] = y.astype(o_ref.dtype)


def pallas_groupnorm(x, gn, n_groups, eps=1e-5, swish=True):
    """x: (B, HW, C) channels-last bf16; gn: {'gamma': (1,C), 'beta': (1,C)}."""
    B, HW, C = x.shape
    # Lane-dense layout: flatten channels into full 128-lane rows when possible.
    if C < 128 and 128 % C == 0 and (HW * C) % 128 == 0:
        LW = 128
    else:
        LW = C
    rep = LW // C
    L = (HW * C) // LW
    xr = x.reshape(B, L, LW)                      # contiguous reshape (free)
    tl = _pick_div(L, 1024, 8)
    LT = L // tl
    gamma = jnp.tile(gn["gamma"].astype(jnp.float32), (1, rep))
    beta = jnp.tile(gn["beta"].astype(jnp.float32), (1, rep))

    out = pl.pallas_call(
        partial(_gn_kernel, n_groups=n_groups, n_ch=C, hw=HW, eps=eps, swish=swish),
        grid=(B, 2, LT),
        in_specs=[pl.BlockSpec((1, tl, LW), lambda b, p, l: (b, l, 0)),
                  pl.BlockSpec((1, LW), lambda b, p, l: (0, 0)),
                  pl.BlockSpec((1, LW), lambda b, p, l: (0, 0))],
        # During the stats pass (p==0) the output index stays at block 0 and is
        # only written (correctly) at the start of the normalize pass.
        out_specs=pl.BlockSpec((1, tl, LW), lambda b, p, l: (b, l * p, 0)),
        out_shape=jax.ShapeDtypeStruct((B, L, LW), jnp.bfloat16),
        scratch_shapes=[pltpu.VMEM((1, LW), jnp.float32)] * 4,
        compiler_params=pltpu.CompilerParams(
            dimension_semantics=("parallel", "arbitrary", "arbitrary"),
            vmem_limit_bytes=_VMEM_LIMIT),
    )(xr, gamma, beta)
    return out.reshape(B, HW, C)


# ----------------------------------------------------------------------------
# Attention block, tiled over the key axis j.  Softmax is over the *query*
# axis (dim=1 in the PyTorch reference), so column (key) blocking is exact.
# Q projection + AV accumulator live in VMEM scratch; residual add fused.
# ----------------------------------------------------------------------------
def _attn_kernel(xf_ref, xk_ref, wq_ref, bq_ref, wk_ref, bk_ref, wv_ref, bv_ref,
                 wo_ref, bo_ref, o_ref, q_scr, acc_scr, *, scale):
    j = pl.program_id(1)

    @pl.when(j == 0)
    def _():
        q = jnp.dot(xf_ref[0], wq_ref[...],
                    preferred_element_type=jnp.float32) + bq_ref[...]
        q_scr[...] = q.astype(jnp.bfloat16)
        acc_scr[...] = jnp.zeros_like(acc_scr)

    xk = xk_ref[0]                                            # (tj, C) bf16
    k = (jnp.dot(xk, wk_ref[...], preferred_element_type=jnp.float32)
         + bk_ref[...]).astype(jnp.bfloat16)
    v = (jnp.dot(xk, wv_ref[...], preferred_element_type=jnp.float32)
         + bv_ref[...]).astype(jnp.bfloat16)
    dn = (((1,), (1,)), ((), ()))
    s = lax.dot_general(q_scr[...], k, dn,
                        preferred_element_type=jnp.float32) * scale   # (N, tj)
    # Reference: attn.softmax(dim=1) on [b, i, j, h] -> normalize over queries i.
    m = jnp.max(s, axis=0, keepdims=True)
    e = jnp.exp(s - m)
    a = e * pl.reciprocal(jnp.sum(e, axis=0, keepdims=True), approx=True)
    acc_scr[...] += jnp.dot(a.astype(jnp.bfloat16), v,
                            preferred_element_type=jnp.float32)

    @pl.when(j == pl.num_programs(1) - 1)
    def _():
        out = jnp.dot(acc_scr[...].astype(jnp.bfloat16), wo_ref[...],
                      preferred_element_type=jnp.float32) + bo_ref[...]
        o_ref[0] = (out + xf_ref[0].astype(jnp.float32)).astype(o_ref.dtype)


def pallas_attention(p, x):
    """x: (B, N, C) bf16.  AttentionBlock.norm is defined but never used in
    the reference forward, so it is intentionally skipped here."""
    B, N, C = x.shape
    dk = p["wq"].shape[1]
    tj = _pick_div(N, 256, 128)
    JT = N // tj
    return pl.pallas_call(
        partial(_attn_kernel, scale=p["scale"]),
        grid=(B, JT),
        in_specs=[pl.BlockSpec((1, N, C), lambda b, j: (b, 0, 0)),
                  pl.BlockSpec((1, tj, C), lambda b, j: (b, j, 0)),
                  pl.BlockSpec(p["wq"].shape, lambda b, j: (0, 0)),
                  pl.BlockSpec(p["bq"].shape, lambda b, j: (0, 0)),
                  pl.BlockSpec(p["wk"].shape, lambda b, j: (0, 0)),
                  pl.BlockSpec(p["bk"].shape, lambda b, j: (0, 0)),
                  pl.BlockSpec(p["wv"].shape, lambda b, j: (0, 0)),
                  pl.BlockSpec(p["bv"].shape, lambda b, j: (0, 0)),
                  pl.BlockSpec(p["wo"].shape, lambda b, j: (0, 0)),
                  pl.BlockSpec(p["bo"].shape, lambda b, j: (0, 0))],
        out_specs=pl.BlockSpec((1, N, C), lambda b, j: (b, 0, 0)),
        out_shape=jax.ShapeDtypeStruct((B, N, C), jnp.bfloat16),
        scratch_shapes=[pltpu.VMEM((N, dk), jnp.bfloat16),
                        pltpu.VMEM((N, dk), jnp.float32)],
        compiler_params=pltpu.CompilerParams(
            dimension_semantics=("parallel", "arbitrary"),
            vmem_limit_bytes=_VMEM_LIMIT),
    )(x, x, p["wq"], p["bq"], p["wk"], p["bk"], p["wv"], p["bv"],
      p["wo"], p["bo"])


# ----------------------------------------------------------------------------
# Tiny dense / fused 2-layer MLP kernels (launch-overhead dominated paths)
# ----------------------------------------------------------------------------
def _dense_kernel(x_ref, w_ref, b_ref, o_ref, *, activation):
    acc = jnp.dot(x_ref[...].astype(jnp.bfloat16), w_ref[...],
                  preferred_element_type=jnp.float32) + b_ref[...]
    if activation == "swish":
        acc = acc * jax.nn.sigmoid(acc)
    elif activation == "sigmoid":
        acc = jax.nn.sigmoid(acc)
    o_ref[...] = acc


def pallas_dense(p, x, activation="none"):
    M, K = x.shape
    _, N = p["w"].shape
    return pl.pallas_call(
        partial(_dense_kernel, activation=activation),
        grid=(1,),
        in_specs=[pl.BlockSpec((M, K), lambda i: (0, 0)),
                  pl.BlockSpec((K, N), lambda i: (0, 0)),
                  pl.BlockSpec((1, N), lambda i: (0, 0))],
        out_specs=pl.BlockSpec((M, N), lambda i: (0, 0)),
        out_shape=jax.ShapeDtypeStruct((M, N), jnp.float32),
    )(x, p["w"], p["b"])


def _mlp2_kernel(x_ref, w1_ref, b1_ref, w2_ref, b2_ref, o_ref):
    h = jnp.dot(x_ref[...].astype(jnp.bfloat16), w1_ref[...],
                preferred_element_type=jnp.float32) + b1_ref[...]
    h = h * jax.nn.sigmoid(h)                                   # Swish
    o_ref[...] = jnp.dot(h.astype(jnp.bfloat16), w2_ref[...],
                         preferred_element_type=jnp.float32) + b2_ref[...]


def pallas_mlp2(p1, p2, x):
    """Fused Linear -> Swish -> Linear (TimeEmbedding / CLOOBEmbedding MLPs)."""
    M, K = x.shape
    H = p1["w"].shape[1]
    N = p2["w"].shape[1]
    return pl.pallas_call(
        _mlp2_kernel,
        grid=(1,),
        in_specs=[pl.BlockSpec((M, K), lambda i: (0, 0)),
                  pl.BlockSpec((K, H), lambda i: (0, 0)),
                  pl.BlockSpec((1, H), lambda i: (0, 0)),
                  pl.BlockSpec((H, N), lambda i: (0, 0)),
                  pl.BlockSpec((1, N), lambda i: (0, 0))],
        out_specs=pl.BlockSpec((M, N), lambda i: (0, 0)),
        out_shape=jax.ShapeDtypeStruct((M, N), jnp.float32),
    )(x, p1["w"], p1["b"], p2["w"], p2["b"])


# ----------------------------------------------------------------------------
# JAX glue: bf16 NHWC im2col, conv / residual-block wrappers
# ----------------------------------------------------------------------------
def _im2col_nhwc(x, kh, kw, stride, pad):
    """x is bf16 NHWC; patch matrix therefore stays bf16 (half the HBM bytes).
    TODO(synk): fold the 3x3 taps into the matmul K grid axis via halo DMA."""
    B, H, W, C = x.shape
    xp = jnp.pad(x, ((0, 0), (pad, pad), (pad, pad), (0, 0)))
    Ho = (H + 2 * pad - kh) // stride + 1
    Wo = (W + 2 * pad - kw) // stride + 1
    cols = []
    for i in range(kh):
        for j in range(kw):
            cols.append(xp[:, i:i + stride * (Ho - 1) + 1:stride,
                              j:j + stride * (Wo - 1) + 1:stride, :])
    cols = jnp.concatenate(cols, axis=-1)                 # (B, Ho, Wo, kh*kw*C)
    return cols.reshape(B, Ho * Wo, kh * kw * C), Ho, Wo


def conv2d_fwd(p, x, H, W, stride=1, pad=1, row_bias=None, residual=None):
    """Conv via bf16 im2col + tiled Pallas matmul.  x is (B, H*W, Cin)."""
    B, HW, C = x.shape
    kh, kw = p["kh"], p["kw"]
    xb = x.astype(jnp.bfloat16)
    if kh == 1 and kw == 1 and stride == 1 and pad == 0:
        cols, Ho, Wo = xb, H, W
    else:
        cols, Ho, Wo = _im2col_nhwc(xb.reshape(B, H, W, C), kh, kw, stride, pad)
    y = pallas_bmm(cols, p["w"], p["b"], p["cout"],
                   row_bias=row_bias, residual=residual)
    return y, Ho, Wo


def residual_fwd(p, x, H, W, cond_bias, n_groups=32):
    h = pallas_groupnorm(x, p["norm1"], n_groups, swish=True)
    # conv1 with the (pre-computed) cond-embedding add fused into the epilogue
    h, _, _ = conv2d_fwd(p["conv1"], h, H, W, row_bias=cond_bias)
    h = pallas_groupnorm(h, p["norm2"], n_groups, swish=True)
    if "shortcut" in p:
        sc, _, _ = conv2d_fwd(p["shortcut"], x, H, W, stride=1, pad=0)
    else:
        sc = x.astype(jnp.bfloat16)
    # conv2 with the residual / shortcut add fused into the output store
    h, _, _ = conv2d_fwd(p["conv2"], h, H, W, residual=sc)
    return h


def time_emb_fwd(p, t, n_time, denom_factor):
    half = n_time // 8
    f = math.log(denom_factor) / (half - 1)
    freqs = jnp.exp(jnp.arange(half, dtype=jnp.float32) * -f)
    e = t[:, None].astype(jnp.float32) * freqs[None, :]
    e = jnp.concatenate([jnp.sin(e), jnp.cos(e)], axis=1)       # (B, n_time//4)
    return pallas_mlp2(p["lin1"], p["lin2"], e)


def discriminator_fwd(params, cfg, x, t, c=None):
    B = x.shape[0]
    n_time = cfg["n_channels"] * 4
    cond = time_emb_fwd(params["time_emb"], t, n_time, cfg["denom_factor"])
    if cfg["use_cloob"]:
        if c is None:
            c = jnp.zeros((B, 512), jnp.float32)
        cond = jnp.concatenate(
            [cond, pallas_mlp2(params["cloob_emb"]["lin1"],
                               params["cloob_emb"]["lin2"], c)], axis=1)

    # All ResidualBlock cond-embedding projections hoisted into ONE dense call.
    cond_all = pallas_dense(params["cond_all"], cond)           # (B, sum(out_c))

    # NCHW -> channels-last once; the whole trunk stays (B, H*W, C) bf16.
    H, W = x.shape[2], x.shape[3]
    xh = x.transpose(0, 2, 3, 1).reshape(B, H * W, x.shape[1]).astype(jnp.bfloat16)
    xh, H, W = conv2d_fwd(params["image_proj"], xh, H, W, stride=1, pad=1)

    for blk in params["down"]:
        if blk["type"] == "down":
            off, sz = blk["res"]["cond_slice"]
            xh = residual_fwd(blk["res"], xh, H, W, cond_all[:, off:off + sz])
            if blk["attn"] is not None:
                xh = pallas_attention(blk["attn"], xh)
        else:                                                   # Downsample
            xh, H, W = conv2d_fwd(blk["conv"], xh, H, W, stride=2, pad=1)

    m = params["middle"]
    off, sz = m["res1"]["cond_slice"]
    xh = residual_fwd(m["res1"], xh, H, W, cond_all[:, off:off + sz])
    xh = pallas_attention(m["attn"], xh)
    off, sz = m["res2"]["cond_slice"]
    xh = residual_fwd(m["res2"], xh, H, W, cond_all[:, off:off + sz])

    pooled = jnp.mean(xh.astype(jnp.float32), axis=1)   # AdaptiveAvgPool + Flatten
    return pallas_dense(params["head_lin"], pooled, activation="sigmoid")


# ----------------------------------------------------------------------------
# Deterministic parameter construction (mirrors Discriminator.__init__),
# pre-transposed / bf16-cast once; weights are only padded when a dim is
# larger than the tile caps (never for this demo config).
# ----------------------------------------------------------------------------
class KeyGen:
    def __init__(self, key):
        self.key = key

    def __call__(self):
        self.key, sub = jax.random.split(self.key)
        return sub


def _linear_init(kg, in_f, out_f):
    w = jax.random.normal(kg(), (out_f, in_f), jnp.float32) * (1.0 / math.sqrt(in_f))
    b = jax.random.normal(kg(), (out_f,), jnp.float32) * 0.01
    return {"w": w, "b": b}


def _conv_init(kg, in_c, out_c, k):
    fan = in_c * k * k
    w = jax.random.normal(kg(), (out_c, in_c, k, k), jnp.float32) * (1.0 / math.sqrt(fan))
    b = jax.random.normal(kg(), (out_c,), jnp.float32) * 0.01
    return {"w": w, "b": b}


def _prep_linear(p):
    return {"w": jnp.asarray(p["w"], jnp.float32).T.astype(jnp.bfloat16),
            "b": jnp.asarray(p["b"], jnp.float32).reshape(1, -1)}


def _prep_conv(p):
    O, C, kh, kw = p["w"].shape
    K = C * kh * kw
    w2 = jnp.asarray(p["w"], jnp.float32).transpose(2, 3, 1, 0).reshape(K, O)
    _, Kp = _plan(K, _TK_CAP, 128)
    _, Np = _plan(O, _TN_CAP, 128)
    if (Kp, Np) != (K, O):
        w2 = jnp.pad(w2, ((0, Kp - K), (0, Np - O)))
    bp = jnp.zeros((Np,), jnp.float32).at[:O].set(jnp.asarray(p["b"], jnp.float32))
    return {"w": w2.astype(jnp.bfloat16), "b": bp,
            "kh": kh, "kw": kw, "cin": C, "cout": O}


def _prep_gn(c):
    return {"gamma": jnp.ones((1, c), jnp.float32),
            "beta": jnp.zeros((1, c), jnp.float32)}


def _prep_attn(kg, n_ch):
    d_k = n_ch                                # AttentionBlock defaults: 1 head, d_k=C
    proj = _linear_init(kg, n_ch, 3 * d_k)
    out = _linear_init(kg, d_k, n_ch)
    wt = jnp.asarray(proj["w"], jnp.float32).T            # (n_ch, 3*d_k)
    bt = jnp.asarray(proj["b"], jnp.float32)
    return {"wq": wt[:, :d_k].astype(jnp.bfloat16),
            "wk": wt[:, d_k:2 * d_k].astype(jnp.bfloat16),
            "wv": wt[:, 2 * d_k:].astype(jnp.bfloat16),
            "bq": bt[:d_k].reshape(1, -1),
            "bk": bt[d_k:2 * d_k].reshape(1, -1),
            "bv": bt[2 * d_k:].reshape(1, -1),
            "wo": jnp.asarray(out["w"], jnp.float32).T.astype(jnp.bfloat16),
            "bo": jnp.asarray(out["b"], jnp.float32).reshape(1, -1),
            "scale": d_k ** -0.5}


def _resblock_init(kg, in_c, out_c, n_cond, cond_acc):
    lin = _linear_init(kg, n_cond, out_c)
    p = {"norm1": _prep_gn(in_c),
         "conv1": _prep_conv(_conv_init(kg, in_c, out_c, 3)),
         "norm2": _prep_gn(out_c),
         "conv2": _prep_conv(_conv_init(kg, out_c, out_c, 3)),
         "cond_slice": (cond_acc["off"], out_c)}
    cond_acc["ws"].append(jnp.asarray(lin["w"], jnp.float32).T)    # (n_cond, out_c)
    cond_acc["bs"].append(jnp.asarray(lin["b"], jnp.float32))
    cond_acc["off"] += out_c
    if in_c != out_c:
        p["shortcut"] = _prep_conv(_conv_init(kg, in_c, out_c, 1))
    return p


def build_params(key, cfg):
    kg = KeyGen(key)
    n_ch = cfg["n_channels"]
    n_time = n_ch * 4
    n_cond = n_time + (cfg["n_cloob_channels"] if cfg["use_cloob"] else 0)
    cond_acc = {"ws": [], "bs": [], "off": 0}
    params = {
        "image_proj": _prep_conv(_conv_init(kg, cfg["image_channels"], n_ch, 3)),
        "time_emb": {"lin1": _prep_linear(_linear_init(kg, n_time // 4, n_time)),
                     "lin2": _prep_linear(_linear_init(kg, n_time, n_time))},
        "cloob_emb": {"lin1": _prep_linear(_linear_init(kg, 512, cfg["n_cloob_channels"])),
                      "lin2": _prep_linear(_linear_init(kg, cfg["n_cloob_channels"],
                                                        cfg["n_cloob_channels"]))},
    }
    down = []
    out_c = in_c = n_ch
    n_res = len(cfg["ch_mults"])
    for i in range(n_res):
        out_c = in_c * cfg["ch_mults"][i]
        for _ in range(cfg["n_blocks"]):
            down.append({"type": "down",
                         "res": _resblock_init(kg, in_c, out_c, n_cond, cond_acc),
                         "attn": _prep_attn(kg, out_c) if cfg["is_attn"][i] else None})
            in_c = out_c
        if i < n_res - 1:
            down.append({"type": "downsample",
                         "conv": _prep_conv(_conv_init(kg, in_c, in_c, 3))})
    params["down"] = down
    params["middle"] = {"res1": _resblock_init(kg, out_c, out_c, n_cond, cond_acc),
                        "attn": _prep_attn(kg, out_c),
                        "res2": _resblock_init(kg, out_c, out_c, n_cond, cond_acc)}
    params["head_lin"] = _prep_linear(_linear_init(kg, out_c, 1))
    # Concatenated cond-embedding weights for the single hoisted dense call.
    params["cond_all"] = {"w": jnp.concatenate(cond_acc["ws"], axis=1).astype(jnp.bfloat16),
                          "b": jnp.concatenate(cond_acc["bs"]).reshape(1, -1)}
    return params


# ----------------------------------------------------------------------------
if __name__ == "__main__":
    # Small-but-valid config (GroupNorm(32) requires channel counts % 32 == 0).
    cfg = dict(image_channels=3, n_channels=32, ch_mults=(1, 2),
               is_attn=(False, True), n_blocks=1, use_cloob=True,
               n_cloob_channels=64, denom_factor=100)

    key = jax.random.PRNGKey(0)
    kp, kx, kt = jax.random.split(key, 3)
    params = build_params(kp, cfg)

    x = jax.random.normal(kx, (2, 3, 16, 16), jnp.float32)    # NCHW image
    t = jax.random.uniform(kt, (2,), jnp.float32) * 10.0      # diffusion timestep
    # c=None -> zeros (B, 512) CLOOB embedding, as in the reference forward.

    out = discriminator_fwd(params, cfg, x, t, c=None)
    out = jax.block_until_ready(out)
    assert out.shape == (2, 1)
    assert bool(jnp.all(jnp.isfinite(out)))
    print("KERNEL_OK")
</pallas_src>

<mosaic_0001>
module attributes {stable_mosaic.version = 11 : i64} {
  func.func @_mlp2_kernel(%arg0: i32, %arg1: memref<2x32xf32, #tpu.memory_space<vmem>>, %arg2: memref<32x128xbf16, #tpu.memory_space<vmem>>, %arg3: memref<1x128xf32, #tpu.memory_space<vmem>>, %arg4: memref<128x128xbf16, #tpu.memory_space<vmem>>, %arg5: memref<1x128xf32, #tpu.memory_space<vmem>>, %arg6: memref<2x128xf32, #tpu.memory_space<vmem>>) attributes {dimension_semantics = [#tpu.dimension_semantics<arbitrary>], iteration_bounds = array<i64: 1>, scalar_prefetch = 0 : i64, scratch_operands = 0 : i64, tpu.core_type = #tpu.core_type<tc>, window_params = [{pipeline_mode = #tpu.pipeline_mode<synchronous>, transform_indices = @transform_0, window_bounds = array<i64: 2, 32>}, {pipeline_mode = #tpu.pipeline_mode<synchronous>, transform_indices = @transform_1, window_bounds = array<i64: 32, 128>}, {pipeline_mode = #tpu.pipeline_mode<synchronous>, transform_indices = @transform_2, window_bounds = array<i64: 1, 128>}, {pipeline_mode = #tpu.pipeline_mode<synchronous>, transform_indices = @transform_3, window_bounds = array<i64: 128, 128>}, {pipeline_mode = #tpu.pipeline_mode<synchronous>, transform_indices = @transform_4, window_bounds = array<i64: 1, 128>}, {pipeline_mode = #tpu.pipeline_mode<synchronous>, transform_indices = @transform_5, window_bounds = array<i64: 2, 128>}]} {
    %c0 = arith.constant 0 : index
    %c0_0 = arith.constant 0 : index
    %0 = vector.load %arg1[%c0, %c0_0] : memref<2x32xf32, #tpu.memory_space<vmem>>, vector<2x32xf32>
    %1 = arith.truncf %0 : vector<2x32xf32> to vector<2x32xbf16>
    %c0_1 = arith.constant 0 : index
    %c0_2 = arith.constant 0 : index
    %2 = vector.load %arg2[%c0_1, %c0_2] : memref<32x128xbf16, #tpu.memory_space<vmem>>, vector<32x128xbf16>
    %cst = arith.constant dense<0.000000e+00> : vector<2x128xf32>
    %3 = tpu.matmul %1, %2, %cst {dimension_numbers = #tpu.dot_dimension_numbers<[1], [0], [0], [1], [0, 0, 1, 1], [], []>} : vector<2x32xbf16>, vector<32x128xbf16>, vector<2x128xf32> -> vector<2x128xf32>
    %c0_3 = arith.constant 0 : index
    %c0_4 = arith.constant 0 : index
    %4 = vector.load %arg3[%c0_3, %c0_4] : memref<1x128xf32, #tpu.memory_space<vmem>>, vector<1x128xf32>
    %5 = vector.broadcast %4 : vector<1x128xf32> to vector<2x128xf32>
    %6 = arith.addf %3, %5 : vector<2x128xf32>
    %7 = arith.negf %6 : vector<2x128xf32>
    %8 = math.exp %7 : vector<2x128xf32>
    %cst_5 = arith.constant 1.000000e+00 : f32
    %9 = vector.broadcast %cst_5 : f32 to vector<2x128xf32>
    %10 = arith.addf %9, %8 : vector<2x128xf32>
    %11 = arith.divf %9, %10 : vector<2x128xf32>
    %12 = arith.mulf %6, %11 : vector<2x128xf32>
    %13 = arith.truncf %12 : vector<2x128xf32> to vector<2x128xbf16>
    %c0_6 = arith.constant 0 : index
    %c0_7 = arith.constant 0 : index
    %14 = vector.load %arg4[%c0_6, %c0_7] : memref<128x128xbf16, #tpu.memory_space<vmem>>, vector<128x128xbf16>
    %cst_8 = arith.constant dense<0.000000e+00> : vector<2x128xf32>
    %15 = tpu.matmul %13, %14, %cst_8 {dimension_numbers = #tpu.dot_dimension_numbers<[1], [0], [0], [1], [0, 0, 1, 1], [], []>} : vector<2x128xbf16>, vector<128x128xbf16>, vector<2x128xf32> -> vector<2x128xf32>
    %c0_9 = arith.constant 0 : index
    %c0_10 = arith.constant 0 : index
    %16 = vector.load %arg5[%c0_9, %c0_10] : memref<1x128xf32, #tpu.memory_space<vmem>>, vector<1x128xf32>
    %17 = vector.broadcast %16 : vector<1x128xf32> to vector<2x128xf32>
    %18 = arith.addf %15, %17 : vector<2x128xf32>
    %c0_11 = arith.constant 0 : index
    %c0_12 = arith.constant 0 : index
    %19 = vector.load %arg6[%c0_11, %c0_12] : memref<2x128xf32, #tpu.memory_space<vmem>>, vector<2x128xf32>
    tpu.vector_store %arg6[%c0_11, %c0_12], %18 {strides = array<i32>} : memref<2x128xf32, #tpu.memory_space<vmem>>, vector<2x128xf32>,
    return
  }
  func.func @transform_0(%arg0: i32) -> (i32, i32) {
    %c0_i32 = arith.constant 0 : i32
    %c0_i32_0 = arith.constant 0 : i32
    %c0_i32_1 = arith.constant 0 : i32
    return %c0_i32, %c0_i32_0 : i32, i32
  }
  func.func @transform_1(%arg0: i32) -> (i32, i32) {
    %c0_i32 = arith.constant 0 : i32
    %c0_i32_0 = arith.constant 0 : i32
    %c0_i32_1 = arith.constant 0 : i32
    return %c0_i32, %c0_i32_0 : i32, i32
  }
  func.func @transform_2(%arg0: i32) -> (i32, i32) {
    %c0_i32 = arith.constant 0 : i32
    %c0_i32_0 = arith.constant 0 : i32
    %c0_i32_1 = arith.constant 0 : i32
    return %c0_i32, %c0_i32_0 : i32, i32
  }
  func.func @transform_3(%arg0: i32) -> (i32, i32) {
    %c0_i32 = arith.constant 0 : i32
    %c0_i32_0 = arith.constant 0 : i32
    %c0_i32_1 = arith.constant 0 : i32
    return %c0_i32, %c0_i32_0 : i32, i32
  }
  func.func @transform_4(%arg0: i32) -> (i32, i32) {
    %c0_i32 = arith.constant 0 : i32
    %c0_i32_0 = arith.constant 0 : i32
    %c0_i32_1 = arith.constant 0 : i32
    return %c0_i32, %c0_i32_0 : i32, i32
  }
  func.func @transform_5(%arg0: i32) -> (i32, i32) {
    %c0_i32 = arith.constant 0 : i32
    %c0_i32_0 = arith.constant 0 : i32
    %c0_i32_1 = arith.constant 0 : i32
    return %c0_i32, %c0_i32_0 : i32, i32
  }
}

</mosaic_0001>

<bundles_post_ra>
// kernel: tpu_custom_call.1
= control target key start
LH: loop header
LB: loop body
LE: loop exit
PB: predicated region body
PF: predicated region fallthrough
CT: control target
= control target key end

     0   :  { %10 = vsyncpa [#allocation3], 0  ;;  %s447_s0 = inlined_call_operand.hbm [shape: f32[2,32], index: 0, kind: input, shape index: {}]   ;;  %s448_s1 = inlined_call_operand.hbm [shape: bf16[32,128], index: 1, kind: input, shape index: {}]   ;;  %s449_s2 = inlined_call_operand.vmem [shape: f32[1,128], index: 2, kind: input, shape index: {}]   ;;  %s450_s3 = inlined_call_operand.hbm [shape: bf16[128,128], index: 3, kind: input, shape index: {}]   ;;  %s451_s4 = inlined_call_operand.vmem [shape: f32[1,128], index: 4, kind: input, shape index: {}]   ;;  %s452_s5 = inlined_call_operand.hbm [shape: f32[2,128], index: 5, kind: output, shape index: {}]  }
   0x1   :  { %11 = vsyncpa [#allocation6], 0  ;;  %s28_s20 = sshll.u32 %s448_s1, 4  ;;  %s29_s20 = int_to_ptr.hbm [resolvable:$true] %s28_s20 }
   0x2   :  { %12 = vsyncpa [#allocation4], 0  ;;  %s393_s21 = smov [#allocation5]   ;;  %s18_s25 = sshll.u32 %s447_s0, 4  ;;  %s19_s25 = int_to_ptr.hbm [resolvable:$true] %s18_s25 }
   0x3   :  { %s30_s22 = sshll.u32 %s393_s21, 4  ;;  %s394_s26 = smov 64   ;;  %s31_s22 = int_to_ptr.vmem [resolvable:$true] %s30_s22 }
   0x4   :  { %s395_s27 = smov 4   ;;  %s396_s28 = smov [#allocation2]  }
   0x5   :  { %36 = dma.hbm_to_vmem [thread:$0]  %s29_s20, 256, %s31_s22, [#allocation6], %s394_s26, %s394_s26, %s395_s27  }
   0x6   :  { %s20_s29 = sshll.u32 %s396_s28, 4  ;;  %s43_s7 = sshll.u32 %s450_s3, 4  ;;  %s21_s29 = int_to_ptr.vmem [resolvable:$true] %s20_s29  ;;  %s44_s7 = int_to_ptr.hbm [resolvable:$true] %s43_s7 }
   0x7   :  { %23 = dma.hbm_to_vmem [thread:$0]  %s19_s25, 32, %s21_s29, [#allocation3]  }
   0x8   :  { %s397_s1 = smov [#allocation7]  }
   0x9   :  { %s45_s8 = sshll.u32 %s397_s1, 4  ;;  %s46_s8 = int_to_ptr.vmem [resolvable:$true] %s45_s8 }
   0xa   :  { %51 = dma.hbm_to_vmem [thread:$0]  %s44_s7, 1024, %s46_s8, [#allocation6], %s394_s26, %s394_s26, %s395_s27  }
   0xb   :  { %387 = dma.done.wait [#allocation3], 32  }
   0xc   :  { %388 = vsyncadd [#allocation3], 4294967264 }
   0xd   :  { %389 = dma.done.wait [#allocation6], 1280  }
   0xe   :  { %390 = vsyncadd [#allocation6], 4294966016  ;;  %v270_v0 = vld [vmem:[#allocation5 + $0x8] sm:$0xff]  ;;  %v269_v1 = vld [vmem:[#allocation5] sm:$0xff]  ;;  %vm89_vm0 = vcmask 261120   ;;  %s398_s10 = smov [#allocation8]  }
   0xf   :  { %99 = vmatpush.bf16.msra.mxu0 %v270_v0  ;;  %v67_v2 = vld [vmem:[#allocation2] sm:$0x3]  ;;  %v278_v4 = vld [vmem:[#allocation7 + $0x38] sm:$0xff]  ;;  %v277_v5 = vld [vmem:[#allocation7 + $0x30] sm:$0xff]  ;;  %s214_s11 = sshll.u32 %s398_s10, 4  ;;  %s216_s14 = sshll.u32 %s452_s5, 4  ;;  %s215_s11 = int_to_ptr.vmem [resolvable:$true] %s214_s11  ;;  %s217_s14 = int_to_ptr.hbm [resolvable:$true] %s216_s14 }
  0x10   :  { %v68_v3 = vpack.c.bf16 %v67_v2, %v67_v2  ;;  %195 = vmatpush.bf16.msra.mxu1 %v278_v4  ;;  %v276_v6 = vld [vmem:[#allocation7 + $0x28] sm:$0xff]  ;;  %v275_v7 = vld [vmem:[#allocation7 + $0x20] sm:$0xff]  ;;  %v274_v8 = vld [vmem:[#allocation7 + $0x18] sm:$0xff] }
  0x11   :  { %v273_v9 = vld [vmem:[#allocation7 + $0x10] sm:$0xff]  ;;  %v272_v10 = vld [vmem:[#allocation7 + $0x8] sm:$0xff]  ;;  %v271_v11 = vld [vmem:[#allocation7] sm:$0xff] }
  0x12   :  { %v285_v12 = vld [vmem:[%s449_s2] ss:$0 sm:$0xff] }
  0x13   :  { %100 = vmatpush.bf16.msra.mxu0 %v269_v1  ;;  %v286_v31 = vld [vmem:[%s451_s4] ss:$0 sm:$0xff] }
  0x14   :  { %196 = vmatpush.bf16.msra.mxu1 %v277_v5 }
  0x16   :  { %235 = vmatmul.msk.bf16.vlgmr.msra.gmra.mxu0 %vm89_vm0, %v68_v3 }
  0x18   :  { %197 = vmatpush.bf16.msra.mxu1 %v276_v6 }
  0x1c   :  { %198 = vmatpush.bf16.msra.mxu1 %v275_v7 }
  0x20   :  { %199 = vmatpush.bf16.msra.mxu1 %v274_v8 }
  0x24   :  { %200 = vmatpush.bf16.msra.mxu1 %v273_v9 }
  0x28   :  { %201 = vmatpush.bf16.msra.mxu1 %v272_v10 }
  0x2c   :  { %202 = vmatpush.bf16.msra.mxu1 %v271_v11 }
  0x93   :  { %v102_v13 = vpop.f32.mrf.mxu0 }
  0x94   :  { %v103_v14 = vadd.f32 %v285_v12, %v102_v13 }
  0x96   :  { %v236_v15 = vmul.f32 -1.442695, %v103_v14 }
  0x98   :  { %287 = vpow2.f32 %v236_v15 }
  0x9b   :  { %v104_v16 = vpop.f32.mrf.mxu0 }
  0x9e   :  { %v288_v17 = vpop.eup %287 }
  0x9f   :  { %v109_v18 = vadd.f32 1.0, %v288_v17 }
  0xa1   :  { %289 = vrcp.f32 %v109_v18  ;;  %v121_v22 = vand.u32 2147483648, %v109_v18  ;;  %v119_v24 = vand.u32 2147483647, %v109_v18  ;;  %vm115_vm2 = vweird.f32 %v109_v18 }
  0xa3   :  { %v122_v26 = vor.u32 1.1754944e-38, %v121_v22  ;;  %vm120_vm4 = vcmp.eq.f32.partialorder %v119_v24, 8.507059e+37 }
  0xa7   :  { %v290_v19 = vpop.eup %289 }
  0xa8   :  { %v111_v20 = vmul.f32 %v290_v19, %v109_v18  ;;  %vm116_vm1 = vweird.f32 %v290_v19 }
  0xa9   :  { %vm117_vm3 = vmor %vm115_vm2, %vm116_vm1 }
  0xaa   :  { %v112_v21 = vsub.f32 1.0, %v111_v20 }
  0xac   :  { %v113_v23 = vmul.f32 %v290_v19, %v112_v21 }
  0xae   :  { %v114_v25 = vadd.f32 %v290_v19, %v113_v23 }
  0xb0   :  { %v118_v27 = vsel %vm117_vm3, %v290_v19, %v114_v25 }
  0xb1   :  { %v123_v28 = vsel %vm120_vm4, %v122_v26, %v118_v27 }
  0xb2   :  { %v125_v29 = vmul.f32 %v123_v28, %v103_v14 }
  0xb4   :  { %v126_v30 = vpack.c.bf16 %v125_v29, %v125_v29 }
  0xb6   :  { %203 = vmatmul.bf16.vlgmr.msra.gmra.mxu1 %v126_v30 }
 0x133   :  { %v204_v32 = vpop.f32.mrf.mxu1 }
 0x134   :  { %v205_v33 = vadd.f32 %v286_v31, %v204_v32 }
 0x136   :  { %208 = vst [vmem:[#allocation8] sm:$0x3] %v205_v33 }
 0x137   :  { %219 = dma.vmem_to_hbm [thread:$0]  %s215_s11, 32, %s217_s14, [#allocation4]  }
 0x13b   :  { %v206_v34 = vpop.f32.mrf.mxu1 }
 0x13c   :  { %391 = dma.done.wait [#allocation4], 32  }
 0x13d   :  { %392 = vsyncadd [#allocation4], 4294967264 }
 0x13e   :  { %224 = vsyncpa [#allocation3], 1 }
 0x13f   :  { %225 = vsyncpa [#allocation6], 1 }
 0x140   :  { %226 = vsyncpa [#allocation4], 1 }

</bundles_post_ra>
